<compile_context>
chip_gen: v7x
topology: tpu7x:2x2x1
jax: 0.10.0
libtpu: 0.0.40
codegen_flags: <defaults>
</compile_context>

<pallas_src>
import functools

import jax
import jax.numpy as jnp
from jax.experimental import pallas as pl
from jax.experimental.pallas import tpu as pltpu


# --------------------------------- kernels ----------------------------------

def _layernorm(x_ref, gamma_ref, beta_ref, *, eps, d_real, d_padded):
    """LayerNorm over the (possibly zero-padded) channel dim; stats over real D only."""
    x = x_ref[...].astype(jnp.float32)                        # (TM, Dp)
    inv_d = 1.0 / d_real
    mean = jnp.sum(x, axis=-1, keepdims=True) * inv_d         # padded lanes are 0
    xc = x - mean
    if d_padded > d_real:                                     # keep padded lanes out of var
        lane = jax.lax.broadcasted_iota(jnp.int32, x.shape, x.ndim - 1)
        xc = jnp.where(lane < d_real, xc, 0.0)
    var = jnp.sum(xc * xc, axis=-1, keepdims=True) * inv_d
    xn = xc * jax.lax.rsqrt(var + eps)
    # padded lanes: gamma/beta are zero-padded -> xn stays exactly 0 there
    return xn * gamma_ref[...].astype(jnp.float32) + beta_ref[...].astype(jnp.float32)


def _prenorm_ff_resident_kernel(x_ref, gamma_ref, beta_ref, w1_ref, b1_ref,
                                w2_ref, b2_ref, o_ref, *, eps, d_real, d_padded,
                                h_chunk, n_h_chunks, approx_gelu):
    """Resident-weight path.  Grid = (row_tiles,) [parallel].  No scratch refs."""
    xn = _layernorm(x_ref, gamma_ref, beta_ref,
                    eps=eps, d_real=d_real, d_padded=d_padded)
    xn_m = xn.astype(w1_ref.dtype)                            # bf16 MXU operand

    def h_block(c):
        s = c * h_chunk                                       # static slice of resident weights
        h = jnp.dot(xn_m, w1_ref[:, s:s + h_chunk],
                    preferred_element_type=jnp.float32)       # (TM, Hc) f32
        h = h + b1_ref[:, s:s + h_chunk].astype(jnp.float32)
        h = jax.nn.gelu(h, approximate=approx_gelu)
        return jnp.dot(h.astype(w2_ref.dtype), w2_ref[s:s + h_chunk, :],
                       preferred_element_type=jnp.float32)    # (TM, Dp) f32

    acc = h_block(0)
    for c in range(1, n_h_chunks):                            # static unroll; weights resident
        acc = acc + h_block(c)
    o_ref[...] = (acc + b2_ref[...].astype(jnp.float32)).astype(o_ref.dtype)


def _prenorm_ff_stream_kernel(x_ref, gamma_ref, beta_ref, w1_ref, b1_ref,
                              w2_ref, b2_ref, o_ref, xn_ref, acc_ref, *,
                              eps, d_real, d_padded, approx_gelu):
    """Streaming-weight fallback.  Grid = (row_tiles [parallel], h_chunks [arbitrary])."""
    h_idx = pl.program_id(1)

    # ---- first H chunk: LayerNorm (f32 stats), cache bf16 xn, init accumulator ----
    @pl.when(h_idx == 0)
    def _():
        xn = _layernorm(x_ref, gamma_ref, beta_ref,
                        eps=eps, d_real=d_real, d_padded=d_padded)
        xn_ref[...] = xn.astype(xn_ref.dtype)
        acc_ref[...] = jnp.zeros_like(acc_ref)

    # ---- one H chunk: Linear(D, Hc) -> GELU -> accumulate Linear(Hc, D) ----
    h = jnp.dot(xn_ref[...], w1_ref[...], preferred_element_type=jnp.float32)
    h = h + b1_ref[...].astype(jnp.float32)
    h = jax.nn.gelu(h, approximate=approx_gelu)
    acc_ref[...] += jnp.dot(h.astype(w2_ref.dtype), w2_ref[...],
                            preferred_element_type=jnp.float32)

    # ---- last H chunk: add output bias and write back ----
    @pl.when(h_idx == pl.num_programs(1) - 1)
    def _():
        o_ref[...] = (acc_ref[...] + b2_ref[...].astype(jnp.float32)).astype(o_ref.dtype)


# --------------------------------- wrapper -----------------------------------

def _round_up(v, m):
    return (v + m - 1) // m * m


def _vmem_capacity_bytes():
    try:
        return int(pltpu.get_tpu_info().vmem_capacity_bytes)
    except Exception:
        return 64 * 1024 * 1024        # conservative: v7x per-TensorCore VMEM


def _pick_h_chunk(Hp):
    if Hp <= 512:
        return Hp
    for c in (512, 384, 256, 128):     # must divide Hp (Hp is a multiple of 128)
        if Hp % c == 0:
            return c
    return Hp


def prenorm_feedforward(x, gamma, beta, w1, b1, w2, b2, *, eps=1e-5,
                        tile_rows=None, h_chunk=None, approx_gelu=True,
                        matmul_dtype=jnp.bfloat16, force_streaming=False):
    """x: (B, N, D) -> (B, N, D)   [fn(LayerNorm(x)) with fn = Linear-GELU-Linear]."""
    B, N, D = x.shape
    H = w1.shape[1]
    rows = B * N
    out_dtype = x.dtype

    # ---- pad channel dims to lane width (128): lane-dense stores + full MXU N ----
    Dp = max(128, _round_up(D, 128))
    Hp = max(128, _round_up(H, 128))

    xf = x.reshape(rows, D)
    if Dp != D:
        xf = jnp.pad(xf, ((0, 0), (0, Dp - D)))

    def pad2(a, r, c):
        return a if a.shape == (r, c) else jnp.pad(a, ((0, r - a.shape[0]), (0, c - a.shape[1])))

    def pad1(v, n):
        return v if v.shape[0] == n else jnp.pad(v, (0, n - v.shape[0]))

    # weights cast ONCE to the MXU dtype; small vectors stay f32 (zero-padded).
    w1c = pad2(w1, Dp, Hp).astype(matmul_dtype)
    w2c = pad2(w2, Hp, Dp).astype(matmul_dtype)
    gamma2 = pad1(gamma, Dp).reshape(1, Dp).astype(jnp.float32)
    beta2 = pad1(beta, Dp).reshape(1, Dp).astype(jnp.float32)
    b1_2 = pad1(b1, Hp).reshape(1, Hp).astype(jnp.float32)
    b2_2 = pad1(b2, Dp).reshape(1, Dp).astype(jnp.float32)

    x_isz = jnp.dtype(x.dtype).itemsize
    o_isz = jnp.dtype(out_dtype).itemsize
    w_isz = jnp.dtype(matmul_dtype).itemsize

    # ---- generation-aware VMEM budget ----
    vmem_cap = _vmem_capacity_bytes()
    big_vmem = vmem_cap >= 96 * 1024 * 1024                 # v5e / v6e (128 MiB)
    budget = min(vmem_cap * 3 // 4, 100 * 1024 * 1024)      # ~48 MiB v7x, ~96 MiB v5e/v6e

    # ---- row tiling: >=8 tiles when possible (megacore load-balance), big tiles otherwise ----
    row_align = 16 if x.dtype == jnp.bfloat16 else 8
    max_tile = 1024 if big_vmem else 512
    if tile_rows is None:
        tile_rows = max(row_align, min(max_tile, _round_up(pl.cdiv(rows, 8), row_align)))
    else:
        tile_rows = max(row_align, _round_up(int(tile_rows), row_align))
    tile_rows = min(tile_rows, _round_up(rows, row_align))

    if h_chunk is None:
        h_chunk = _pick_h_chunk(Hp)
    h_chunk = min(int(h_chunk), Hp)
    if Hp % h_chunk != 0:                                   # never accumulate padded garbage
        h_chunk = Hp
    n_h_chunks = Hp // h_chunk

    # ---- resident vs streaming decision (count 2x pipeline buffers everywhere) ----
    bias_bytes = 2 * 8 * (3 * Dp + Hp) * 4                  # (1,*) blocks pad to 8 sublanes
    act_bytes = 2 * tile_rows * Dp * (x_isz + o_isz)
    resident_weight_bytes = 2 * 2 * Dp * Hp * w_isz
    resident_tmp = 3 * tile_rows * (Dp + h_chunk) * 4       # xn / h / acc compiler temporaries
    resident_est = resident_weight_bytes + bias_bytes + act_bytes + resident_tmp
    use_resident = (not force_streaming) and (resident_est <= budget)

    grid_rows = pl.cdiv(rows, tile_rows)

    if use_resident:
        kernel = functools.partial(
            _prenorm_ff_resident_kernel, eps=eps, d_real=D, d_padded=Dp,
            h_chunk=h_chunk, n_h_chunks=n_h_chunks, approx_gelu=approx_gelu)
        out = pl.pallas_call(
            kernel,
            out_shape=jax.ShapeDtypeStruct((rows, Dp), out_dtype),
            grid_spec=pltpu.PrefetchScalarGridSpec(
                num_scalar_prefetch=0,
                grid=(grid_rows,),
                in_specs=[
                    pl.BlockSpec((tile_rows, Dp), lambda i: (i, 0)),  # x rows
                    pl.BlockSpec((1, Dp), lambda i: (0, 0)),          # gamma
                    pl.BlockSpec((1, Dp), lambda i: (0, 0)),          # beta
                    # constant index_map -> weights DMA'd once, resident across all row tiles
                    pl.BlockSpec((Dp, Hp), lambda i: (0, 0)),         # w1 (full)
                    pl.BlockSpec((1, Hp), lambda i: (0, 0)),          # b1
                    pl.BlockSpec((Hp, Dp), lambda i: (0, 0)),         # w2 (full)
                    pl.BlockSpec((1, Dp), lambda i: (0, 0)),          # b2
                ],
                out_specs=pl.BlockSpec((tile_rows, Dp), lambda i: (i, 0)),
            ),
            compiler_params=pltpu.CompilerParams(
                dimension_semantics=("parallel",),
                vmem_limit_bytes=int(budget)),
        )(xf, gamma2, beta2, w1c, b1_2, w2c, b2_2)
    else:
        # shrink the row tile until the streamed working set fits the budget
        def stream_est(tr):
            return (2 * 2 * Dp * h_chunk * w_isz            # w1/w2 chunks (double-buffered)
                    + bias_bytes
                    + 2 * tr * Dp * (x_isz + o_isz)          # x / out blocks
                    + tr * Dp * (w_isz + 4)                  # xn cache + f32 accumulator
                    + 3 * tr * h_chunk * 4)                  # intermediates headroom
        while tile_rows > row_align and stream_est(tile_rows) > budget:
            tile_rows = max(row_align, _round_up(tile_rows // 2, row_align))
        grid_rows = pl.cdiv(rows, tile_rows)

        kernel = functools.partial(
            _prenorm_ff_stream_kernel, eps=eps, d_real=D, d_padded=Dp,
            approx_gelu=approx_gelu)
        out = pl.pallas_call(
            kernel,
            out_shape=jax.ShapeDtypeStruct((rows, Dp), out_dtype),
            grid_spec=pltpu.PrefetchScalarGridSpec(
                num_scalar_prefetch=0,
                grid=(grid_rows, n_h_chunks),
                in_specs=[
                    pl.BlockSpec((tile_rows, Dp), lambda i, h: (i, 0)),   # x rows
                    pl.BlockSpec((1, Dp), lambda i, h: (0, 0)),           # gamma
                    pl.BlockSpec((1, Dp), lambda i, h: (0, 0)),           # beta
                    pl.BlockSpec((Dp, h_chunk), lambda i, h: (0, h)),     # w1 chunk
                    pl.BlockSpec((1, h_chunk), lambda i, h: (0, h)),      # b1 chunk
                    pl.BlockSpec((h_chunk, Dp), lambda i, h: (h, 0)),     # w2 chunk
                    pl.BlockSpec((1, Dp), lambda i, h: (0, 0)),           # b2
                ],
                out_specs=pl.BlockSpec((tile_rows, Dp), lambda i, h: (i, 0)),
                scratch_shapes=[
                    pltpu.VMEM((tile_rows, Dp), matmul_dtype),            # cached LayerNorm(x)
                    pltpu.VMEM((tile_rows, Dp), jnp.float32),             # output accumulator
                ],
            ),
            compiler_params=pltpu.CompilerParams(
                dimension_semantics=("parallel", "arbitrary"),
                vmem_limit_bytes=int(budget)),
        )(xf, gamma2, beta2, w1c, b1_2, w2c, b2_2)

    if Dp != D:
        out = out[:, :D]
    return out.reshape(B, N, D)


# ------------------------------ reference / tests ----------------------------

def _reference(x, gamma, beta, w1, b1, w2, b2, eps=1e-5):
    xf = x.astype(jnp.float32)
    mean = jnp.mean(xf, axis=-1, keepdims=True)
    var = jnp.mean(jnp.square(xf - mean), axis=-1, keepdims=True)
    xn = (xf - mean) * jax.lax.rsqrt(var + eps) * gamma + beta
    h = jax.nn.gelu(xn @ w1 + b1, approximate=False)   # torch-default exact GELU
    return (h @ w2 + b2).astype(x.dtype)


def _make_params(key, D, H):
    k1, k2, k3, k4 = jax.random.split(key, 4)
    gamma = jnp.ones((D,), jnp.float32)                # torch LayerNorm default init
    beta = jnp.zeros((D,), jnp.float32)
    w1 = jax.random.normal(k1, (D, H), jnp.float32) * 0.02
    b1 = jax.random.normal(k2, (H,), jnp.float32) * 0.02
    w2 = jax.random.normal(k3, (H, D), jnp.float32) * 0.02
    b2 = jax.random.normal(k4, (D,), jnp.float32) * 0.02
    return gamma, beta, w1, b1, w2, b2


if __name__ == "__main__":
    key = jax.random.PRNGKey(0)
    kx1, kp1, kx2, kp2 = jax.random.split(key, 4)

    # --- test 1: tiny CTA-like shape. D=32 -> lane padding to 128; resident weights;
    #             single H chunk -> direct write path (no accumulator) ---
    B, N, D, H = 2, 8, 32, 64
    x = jax.random.normal(kx1, (B, N, D), dtype=jnp.float32)
    gamma, beta, w1, b1, w2, b2 = _make_params(kp1, D, H)

    out = jax.block_until_ready(prenorm_feedforward(x, gamma, beta, w1, b1, w2, b2))
    ref = _reference(x, gamma, beta, w1, b1, w2, b2)
    assert out.shape == (B, N, D), out.shape
    # bf16 MXU matmuls (f32 accumulation) + tanh GELU -> tolerance looser than pure f32.
    assert jnp.allclose(out, ref, atol=2e-2, rtol=2e-2), float(jnp.max(jnp.abs(out - ref)))

    # --- test 2: resident weights with in-kernel H chunking (2 chunks) + multi row tiles ---
    B2, N2, D2, H2 = 2, 24, 128, 256
    x2 = jax.random.normal(kx2, (B2, N2, D2), dtype=jnp.float32)
    g2, be2, w1b, b1b, w2b, b2b = _make_params(kp2, D2, H2)

    out2 = jax.block_until_ready(
        prenorm_feedforward(x2, g2, be2, w1b, b1b, w2b, b2b, h_chunk=128))
    ref2 = _reference(x2, g2, be2, w1b, b1b, w2b, b2b)
    assert out2.shape == (B2, N2, D2), out2.shape
    assert jnp.allclose(out2, ref2, atol=2e-2, rtol=2e-2), float(jnp.max(jnp.abs(out2 - ref2)))

    # --- test 3: exercise the streaming fallback (2-D grid, VMEM accumulator) ---
    out3 = jax.block_until_ready(
        prenorm_feedforward(x2, g2, be2, w1b, b1b, w2b, b2b,
                            tile_rows=16, h_chunk=128, force_streaming=True))
    assert jnp.allclose(out3, ref2, atol=2e-2, rtol=2e-2), float(jnp.max(jnp.abs(out3 - ref2)))

    print("KERNEL_OK")
</pallas_src>

<mosaic_0001>
module attributes {stable_mosaic.version = 11 : i64} {
  func.func @_prenorm_ff_resident_kernel(%arg0: i32, %arg1: memref<8x128xf32, #tpu.memory_space<vmem>>, %arg2: memref<1x128xf32, #tpu.memory_space<vmem>>, %arg3: memref<1x128xf32, #tpu.memory_space<vmem>>, %arg4: memref<128x128xbf16, #tpu.memory_space<vmem>>, %arg5: memref<1x128xf32, #tpu.memory_space<vmem>>, %arg6: memref<128x128xbf16, #tpu.memory_space<vmem>>, %arg7: memref<1x128xf32, #tpu.memory_space<vmem>>, %arg8: memref<8x128xf32, #tpu.memory_space<vmem>>) attributes {dimension_semantics = [#tpu.dimension_semantics<parallel>], iteration_bounds = array<i64: 2>, scalar_prefetch = 0 : i64, scratch_operands = 0 : i64, tpu.core_type = #tpu.core_type<tc>, window_params = [{transform_indices = @transform_0, window_bounds = array<i64: 8, 128>}, {pipeline_mode = #tpu.pipeline_mode<synchronous>, transform_indices = @transform_1, window_bounds = array<i64: 1, 128>}, {pipeline_mode = #tpu.pipeline_mode<synchronous>, transform_indices = @transform_2, window_bounds = array<i64: 1, 128>}, {pipeline_mode = #tpu.pipeline_mode<synchronous>, transform_indices = @transform_3, window_bounds = array<i64: 128, 128>}, {pipeline_mode = #tpu.pipeline_mode<synchronous>, transform_indices = @transform_4, window_bounds = array<i64: 1, 128>}, {pipeline_mode = #tpu.pipeline_mode<synchronous>, transform_indices = @transform_5, window_bounds = array<i64: 128, 128>}, {pipeline_mode = #tpu.pipeline_mode<synchronous>, transform_indices = @transform_6, window_bounds = array<i64: 1, 128>}, {transform_indices = @transform_7, window_bounds = array<i64: 8, 128>}]} {
    %c0 = arith.constant 0 : index
    %c0_0 = arith.constant 0 : index
    %0 = vector.load %arg1[%c0, %c0_0] : memref<8x128xf32, #tpu.memory_space<vmem>>, vector<8x128xf32>
    %cst = arith.constant dense<0.000000e+00> : vector<8xf32>
    %1 = vector.multi_reduction <add>, %0, %cst [1] : vector<8x128xf32> to vector<8xf32>
    %2 = vector.shape_cast %1 : vector<8xf32> to vector<8x1xf32>
    %cst_1 = arith.constant 3.125000e-02 : f32
    %3 = vector.broadcast %cst_1 : f32 to vector<8x1xf32>
    %4 = arith.mulf %2, %3 : vector<8x1xf32>
    %5 = vector.broadcast %4 : vector<8x1xf32> to vector<8x128xf32>
    %6 = arith.subf %0, %5 : vector<8x128xf32>
    %7 = tpu.iota {dimensions = array<i32: 1>} : vector<8x128xi32>
    %c32_i32 = arith.constant 32 : i32
    %8 = vector.broadcast %c32_i32 : i32 to vector<8x128xi32>
    %9 = arith.cmpi slt, %7, %8 : vector<8x128xi32>
    %cst_2 = arith.constant 0.000000e+00 : f32
    %10 = vector.broadcast %cst_2 : f32 to vector<8x128xf32>
    %11 = arith.select %9, %6, %10 : vector<8x128xi1>, vector<8x128xf32>
    %12 = arith.mulf %11, %11 : vector<8x128xf32>
    %cst_3 = arith.constant dense<0.000000e+00> : vector<8xf32>
    %13 = vector.multi_reduction <add>, %12, %cst_3 [1] : vector<8x128xf32> to vector<8xf32>
    %14 = vector.shape_cast %13 : vector<8xf32> to vector<8x1xf32>
    %cst_4 = arith.constant 3.125000e-02 : f32
    %15 = vector.broadcast %cst_4 : f32 to vector<8x1xf32>
    %16 = arith.mulf %14, %15 : vector<8x1xf32>
    %cst_5 = arith.constant 9.99999974E-6 : f32
    %17 = vector.broadcast %cst_5 : f32 to vector<8x1xf32>
    %18 = arith.addf %16, %17 : vector<8x1xf32>
    %19 = math.rsqrt %18 : vector<8x1xf32>
    %20 = vector.broadcast %19 : vector<8x1xf32> to vector<8x128xf32>
    %21 = arith.mulf %11, %20 : vector<8x128xf32>
    %c0_6 = arith.constant 0 : index
    %c0_7 = arith.constant 0 : index
    %22 = vector.load %arg2[%c0_6, %c0_7] : memref<1x128xf32, #tpu.memory_space<vmem>>, vector<1x128xf32>
    %23 = vector.broadcast %22 : vector<1x128xf32> to vector<8x128xf32>
    %24 = arith.mulf %21, %23 : vector<8x128xf32>
    %c0_8 = arith.constant 0 : index
    %c0_9 = arith.constant 0 : index
    %25 = vector.load %arg3[%c0_8, %c0_9] : memref<1x128xf32, #tpu.memory_space<vmem>>, vector<1x128xf32>
    %26 = vector.broadcast %25 : vector<1x128xf32> to vector<8x128xf32>
    %27 = arith.addf %24, %26 : vector<8x128xf32>
    %28 = arith.truncf %27 : vector<8x128xf32> to vector<8x128xbf16>
    %c0_10 = arith.constant 0 : index
    %c0_11 = arith.constant 0 : index
    %29 = vector.load %arg4[%c0_10, %c0_11] : memref<128x128xbf16, #tpu.memory_space<vmem>>, vector<128x128xbf16>
    %cst_12 = arith.constant dense<0.000000e+00> : vector<8x128xf32>
    %30 = tpu.matmul %28, %29, %cst_12 {dimension_numbers = #tpu.dot_dimension_numbers<[1], [0], [0], [1], [0, 0, 1, 1], [], []>} : vector<8x128xbf16>, vector<128x128xbf16>, vector<8x128xf32> -> vector<8x128xf32>
    %c0_13 = arith.constant 0 : index
    %c0_14 = arith.constant 0 : index
    %31 = vector.load %arg5[%c0_13, %c0_14] : memref<1x128xf32, #tpu.memory_space<vmem>>, vector<1x128xf32>
    %32 = vector.broadcast %31 : vector<1x128xf32> to vector<8x128xf32>
    %33 = arith.addf %30, %32 : vector<8x128xf32>
    %34 = arith.mulf %33, %33 : vector<8x128xf32>
    %35 = arith.mulf %33, %34 : vector<8x128xf32>
    %cst_15 = arith.constant 4.471500e-02 : f32
    %36 = vector.broadcast %cst_15 : f32 to vector<8x128xf32>
    %37 = arith.mulf %36, %35 : vector<8x128xf32>
    %38 = arith.addf %33, %37 : vector<8x128xf32>
    %cst_16 = arith.constant 0.797884583 : f32
    %39 = vector.broadcast %cst_16 : f32 to vector<8x128xf32>
    %40 = arith.mulf %39, %38 : vector<8x128xf32>
    %41 = math.tanh %40 : vector<8x128xf32>
    %cst_17 = arith.constant 1.000000e+00 : f32
    %42 = vector.broadcast %cst_17 : f32 to vector<8x128xf32>
    %43 = arith.addf %42, %41 : vector<8x128xf32>
    %cst_18 = arith.constant 5.000000e-01 : f32
    %44 = vector.broadcast %cst_18 : f32 to vector<8x128xf32>
    %45 = arith.mulf %44, %43 : vector<8x128xf32>
    %46 = arith.mulf %33, %45 : vector<8x128xf32>
    %47 = arith.truncf %46 : vector<8x128xf32> to vector<8x128xbf16>
    %c0_19 = arith.constant 0 : index
    %c0_20 = arith.constant 0 : index
    %48 = vector.load %arg6[%c0_19, %c0_20] : memref<128x128xbf16, #tpu.memory_space<vmem>>, vector<128x128xbf16>
    %cst_21 = arith.constant dense<0.000000e+00> : vector<8x128xf32>
    %49 = tpu.matmul %47, %48, %cst_21 {dimension_numbers = #tpu.dot_dimension_numbers<[1], [0], [0], [1], [0, 0, 1, 1], [], []>} : vector<8x128xbf16>, vector<128x128xbf16>, vector<8x128xf32> -> vector<8x128xf32>
    %c0_22 = arith.constant 0 : index
    %c0_23 = arith.constant 0 : index
    %50 = vector.load %arg7[%c0_22, %c0_23] : memref<1x128xf32, #tpu.memory_space<vmem>>, vector<1x128xf32>
    %51 = vector.broadcast %50 : vector<1x128xf32> to vector<8x128xf32>
    %52 = arith.addf %49, %51 : vector<8x128xf32>
    %c0_24 = arith.constant 0 : index
    %c0_25 = arith.constant 0 : index
    %53 = vector.load %arg8[%c0_24, %c0_25] : memref<8x128xf32, #tpu.memory_space<vmem>>, vector<8x128xf32>
    tpu.vector_store %arg8[%c0_24, %c0_25], %52 {strides = array<i32>} : memref<8x128xf32, #tpu.memory_space<vmem>>, vector<8x128xf32>,
    return
  }
  func.func @transform_0(%arg0: i32) -> (i32, i32) {
    %c0_i32 = arith.constant 0 : i32
    %c0_i32_0 = arith.constant 0 : i32
    return %arg0, %c0_i32 : i32, i32
  }
  func.func @transform_1(%arg0: i32) -> (i32, i32) {
    %c0_i32 = arith.constant 0 : i32
    %c0_i32_0 = arith.constant 0 : i32
    %c0_i32_1 = arith.constant 0 : i32
    return %c0_i32, %c0_i32_0 : i32, i32
  }
  func.func @transform_2(%arg0: i32) -> (i32, i32) {
    %c0_i32 = arith.constant 0 : i32
    %c0_i32_0 = arith.constant 0 : i32
    %c0_i32_1 = arith.constant 0 : i32
    return %c0_i32, %c0_i32_0 : i32, i32
  }
  func.func @transform_3(%arg0: i32) -> (i32, i32) {
    %c0_i32 = arith.constant 0 : i32
    %c0_i32_0 = arith.constant 0 : i32
    %c0_i32_1 = arith.constant 0 : i32
    return %c0_i32, %c0_i32_0 : i32, i32
  }
  func.func @transform_4(%arg0: i32) -> (i32, i32) {
    %c0_i32 = arith.constant 0 : i32
    %c0_i32_0 = arith.constant 0 : i32
    %c0_i32_1 = arith.constant 0 : i32
    return %c0_i32, %c0_i32_0 : i32, i32
  }
  func.func @transform_5(%arg0: i32) -> (i32, i32) {
    %c0_i32 = arith.constant 0 : i32
    %c0_i32_0 = arith.constant 0 : i32
    %c0_i32_1 = arith.constant 0 : i32
    return %c0_i32, %c0_i32_0 : i32, i32
  }
  func.func @transform_6(%arg0: i32) -> (i32, i32) {
    %c0_i32 = arith.constant 0 : i32
    %c0_i32_0 = arith.constant 0 : i32
    %c0_i32_1 = arith.constant 0 : i32
    return %c0_i32, %c0_i32_0 : i32, i32
  }
  func.func @transform_7(%arg0: i32) -> (i32, i32) {
    %c0_i32 = arith.constant 0 : i32
    %c0_i32_0 = arith.constant 0 : i32
    return %arg0, %c0_i32 : i32, i32
  }
}

</mosaic_0001>

<bundles_post_ra>
// kernel: tpu_custom_call.1
= control target key start
LH: loop header
LB: loop body
LE: loop exit
PB: predicated region body
PF: predicated region fallthrough
CT: control target
= control target key end

     0   :  { %12 = vsyncpa [#allocation3], 0  ;;  %s1347_s0 = inlined_call_operand.hbm [shape: f32[16,128], index: 0, kind: input, shape index: {}]   ;;  %s1348_s1 = inlined_call_operand.vmem [shape: f32[1,128], index: 1, kind: input, shape index: {}]   ;;  %s1349_s2 = inlined_call_operand.vmem [shape: f32[1,128], index: 2, kind: input, shape index: {}]   ;;  %s1350_s3 = inlined_call_operand.hbm [shape: bf16[128,128], index: 3, kind: input, shape index: {}]   ;;  %s1351_s4 = inlined_call_operand.vmem [shape: f32[1,128], index: 4, kind: input, shape index: {}]   ;;  %s1352_s5 = inlined_call_operand.hbm [shape: bf16[128,128], index: 5, kind: input, shape index: {}]   ;;  %s1353_s6 = inlined_call_operand.vmem [shape: f32[1,128], index: 6, kind: input, shape index: {}]   ;;  %s1354_s7 = inlined_call_operand.hbm [shape: f32[16,128], index: 7, kind: output, shape index: {}]  }
   0x1   :  { %14 = vsyncpa [#allocation3 + $0x1], 0 }
   0x2   :  { %15 = vsyncpa [#allocation6], 0 }
   0x3   :  { %16 = vsyncpa [#allocation4], 0 }
   0x4   :  { %18 = vsyncpa [#allocation4 + $0x1], 0  ;;  %s1084_s24 = smov 0   ;;  %s1086_s25 = smov 0  }
   0x5   :  { %s1088_s26 = smov 0   ;;  %s1090_s27 = smov 0  }
   0x6 LB: > { %s1105_s28 = sadd.s32 4294967295, %s1034_s27   ;;  %s693_s29 = sadd.s32 4294967294, %s1034_s27   ;;  %s1034_s27 = sphi %s1090_s27, %s1374_s27   ;;  %s1030_s26 = sphi %s1088_s26, %s1373_s26   ;;  %s1026_s25 = sphi %s1086_s25, %s1372_s25   ;;  %s1022_s24 = sphi %s1084_s24, %s1371_s24  }
   0x7   : > { %p44_p0 = scmp.ne.s32.totalorder %s1026_s25, %s1022_s24  ;;  %p1355_p1 = scmp.eq.s32.totalorder %s1105_s28, 0 }
   0x8   : > { %p200_p3 = scmp.eq.s32.totalorder %s693_s29, 1  ;;  %p694_p5 = scmp.ge.s32.totalorder %s1034_s27, 1 }
   0x9   : > { %p1114_p4 = por %p1355_p1, %p44_p0  ;;  %p207_p7 = scmp.lt.s32.totalorder %s1034_s27, 3 }
   0xa   : > { %p1119_p6 = por %p200_p3, %p44_p0  ;;  %s1036_s10 = smov [#allocation5]  }
   0xb   : > { %s1358_s30 = scalar_select %p1114_p4, 1, 0 }
   0xc   : > { %s1359_s8 = scalar_select %p1119_p6, 1, 0 }
   0xd   : > { %p1124_p8 = pnand %p694_p5, %p207_p7  ;;  %s225_s11 = sshll.u32 %s1036_s10, 4  ;;  %s1128_s11 = int_to_ptr.vmem [resolvable:$true] %s225_s11 }
   0xe   : > { %s1037_s13 = smov [#allocation7]   ;;  %s878_s17 = scalar_lea.hbm %s1350_s3, 1024 }
   0xf   : > { %p799_p9 = pneg %p1124_p8  ;;  %s241_s14 = sshll.u32 %s1037_s13, 4  ;;  %s1139_s14 = int_to_ptr.vmem [resolvable:$true] %s241_s14 }
  0x10   : > { %p879_p12 = scmp.ne.s32.totalorder %s1350_s3, %s878_s17  ;;  %p885_p5 = scmp.lt.u32.totalorder %s878_s17, %s1350_s3 }
  0x11   : > { %p1135_p11 = pnand %p799_p9, %p1355_p1 }
  0x13   : > { %p880_p13 = pneg %p1135_p11 }
  0x15   : > { %p881_p0 = pnand %p880_p13, %p879_p12 }
  0x17   : > { %p882_p3 = pneg %p881_p0 }
  0x19   : > { %p887_p7 = pnand %p885_p5, %p882_p3 }
  0x1b   : > { %890 = shalt.err (!%p887_p7)
}
  0x1c   : > { %s891_s22 = scalar_lea.vmem %s1128_s11, 1024  ;;  %p899_p2 = scmp.lt.s32.totalorder %s1128_s11, %s1128_s11 }
  0x1d   : > { %p892_p9 = scmp.ne.s32.totalorder %s1128_s11, %s891_s22  ;;  %p900_p12 = scmp.lt.s32.totalorder %s891_s22, %s891_s22 }
  0x1f   : > { %p894_p10 = pnand %p892_p9, %p880_p13  ;;  %p901_p0 = por %p900_p12, %p899_p2 }
  0x21   : > { %p895_p1 = pneg %p894_p10 }
  0x23   : > { %p902_p6 = pnand %p901_p0, %p895_p1 }
  0x25   : > { %905 = shalt.err (!%p902_p6)
}
  0x26   : > { %s1038_s23 = smov 64   ;;  %s1039_s29 = smov 4  }
  0x27   : > { %802 = dma.hbm_to_vmem [thread:$0]  (!%p1135_p11), %s1350_s3, 1024, %s1128_s11, [#allocation6], %s1038_s23, %s1038_s23, %s1039_s29  }
  0x28   : > { %s906_s17 = scalar_lea.hbm %s1352_s5, 1024 }
  0x29   : > { %p907_p2 = scmp.ne.s32.totalorder %s1352_s5, %s906_s17  ;;  %p913_p10 = scmp.lt.u32.totalorder %s906_s17, %s1352_s5 }
  0x2b   : > { %p909_p1 = pnand %p907_p2, %p880_p13 }
  0x2d   : > { %p910_p6 = pneg %p909_p1 }
  0x2f   : > { %p915_p3 = pnand %p913_p10, %p910_p6 }
  0x31   : > { %918 = shalt.err (!%p915_p3)
}
  0x32   : > { %s919_s11 = scalar_lea.vmem %s1139_s14, 1024  ;;  %p927_p12 = scmp.lt.s32.totalorder %s1139_s14, %s1139_s14 }
  0x33   : > { %p920_p5 = scmp.ne.s32.totalorder %s1139_s14, %s919_s11  ;;  %p928_p0 = scmp.lt.s32.totalorder %s919_s11, %s919_s11 }
  0x35   : > { %p922_p7 = pnand %p920_p5, %p880_p13  ;;  %p929_p2 = por %p928_p0, %p927_p12 }
  0x37   : > { %p923_p9 = pneg %p922_p7 }
  0x39   : > { %p930_p1 = pnand %p929_p2, %p923_p9 }
  0x3b   : > { %933 = shalt.err (!%p930_p1)
}
  0x3c   : > { %805 = dma.hbm_to_vmem [thread:$0]  (!%p1135_p11), %s1352_s5, 1024, %s1139_s14, [#allocation6], %s1038_s23, %s1038_s23, %s1039_s29  }
  0x3d   : > { %s1194_s13 = sadd.s32 1, %s1034_s27   ;;  %s31_s12 = sadd.s32 1, %s1030_s26 }
  0x3e   : > { %s28_s15 = ssub.s32 %s1034_s27, %s1194_s13  ;;  %p38_p13 = scmp.ne.s32.totalorder %s1030_s26, %s1026_s25 }
  0x3f   : > { %p29_p6 = scmp.eq.s32.totalorder %s28_s15, 0  ;;  %p39_p10 = scmp.eq.s32.totalorder %s1034_s27, 0 }
  0x40   : > { %p1362_p3 = scmp.eq.s32.totalorder %s1105_s28, 1  ;;  %p816_p7 = scmp.lt.s32.totalorder %s1034_s27, 2 }
  0x41   : > { %s1210_s17 = scalar_select %p29_p6, %s1030_s26, %s31_s12  }
  0x42   : > { %p1204_p5 = por %p1362_p3, %p38_p13  ;;  %p40_p9 = por %p39_p10, %p38_p13 }
  0x43   : > { %s258_s18 = sand.u32 1, %s1030_s26   ;;  %s699_s14 = sshll.u32 %s1034_s27, 7 }
  0x44   : > { %s1363_s16 = scalar_select %p1204_p5, 1, 0 }
  0x45   : > { %s698_s19 = sshll.u32 %s258_s18, 3  ;;  %s1217_s20 = scalar_lea.hbm %s1347_s0, %s699_s14 }
  0x46   : > { %s262_s21 = scalar_lea.vmem [#allocation2], %s698_s19  ;;  %p1221_p11 = pnand %p816_p7, %p40_p9 }
  0x47   : > { %s269_s11 = sshll.u32 %s262_s21, 4  ;;  %s259_s10 = scalar_lea.sflag [#allocation3], %s258_s18  ;;  %s1219_s11 = int_to_ptr.vmem [resolvable:$true] %s269_s11 }
  0x48   : > { %s934_s12 = scalar_lea.hbm %s1217_s20, 128  ;;  %p936_p0 = pneg %p1221_p11 }
  0x49   : > { %p935_p12 = scmp.ne.s32.totalorder %s1217_s20, %s934_s12  ;;  %s939_s14 = scalar_lea.hbm %s1347_s0, 256 }
  0x4a   : > { %p940_p13 = scmp.lt.u32.totalorder %s1217_s20, %s1347_s0  ;;  %p941_p6 = scmp.lt.u32.totalorder %s939_s14, %s934_s12 }
  0x4b   : > { %p937_p2 = pnand %p936_p0, %p935_p12  ;;  %p943_p3 = scmp.lt.u32.totalorder %s934_s12, %s1217_s20 }
  0x4c   : > { %p942_p10 = por %p941_p6, %p940_p13 }
  0x4d   : > { %p938_p1 = pneg %p937_p2 }
  0x4e   : > { %p944_p7 = por %p943_p3, %p942_p10 }
  0x50   : > { %p945_p9 = pnand %p944_p7, %p938_p1 }
  0x52   : > { %948 = shalt.err (!%p945_p9)
}
  0x53   : > { %s949_s18 = scalar_lea.vmem %s1219_s11, 128  ;;  %s1040_s21 = smov [#allocation2]  }
  0x54   : > { %p950_p12 = scmp.ne.s32.totalorder %s1219_s11, %s949_s18  ;;  %s954_s15 = sshll.u32 %s1040_s21, 4  ;;  %s955_s15 = int_to_ptr.vmem [resolvable:$false] %s954_s15 }
  0x55   : > { %s956_s19 = scalar_lea.vmem %s955_s15, 256  ;;  %p957_p4 = scmp.lt.s32.totalorder %s1219_s11, %s955_s15 }
  0x56   : > { %p952_p2 = pnand %p950_p12, %p936_p0  ;;  %p958_p13 = scmp.lt.s32.totalorder %s956_s19, %s949_s18 }
  0x58   : > { %p953_p5 = pneg %p952_p2  ;;  %p959_p6 = por %p958_p13, %p957_p4 }
  0x5a   : > { %p960_p10 = pnand %p959_p6, %p953_p5 }
  0x5c   : > { %963 = shalt.err (!%p960_p10)
}
  0x5d   : > { %809 = dma.hbm_to_vmem [thread:$0]  (!%p1221_p11), %s1217_s20, 128, %s1219_s11, %s259_s10  }
  0x5e   : > { %278 = sbr.rel (%p1124_p8) target bundleno = 891 (0x37b), region = 48  ;;  %s1253_s12 = sand.u32 (!%p1124_p8), 1, %s1026_s25  }
  0x5f   : > { %s701_s14 = sshll.u32 (!%p1124_p8), %s1253_s12, 3  ;;  %s281_s23 = scalar_lea.sflag (!%p1124_p8), [#allocation3], %s1253_s12 }
  0x60   : > { %s284_s29 = scalar_lea.vmem (!%p1124_p8), [#allocation2], %s701_s14  ;;  %p1365_p4 = scmp.ne.s32.totalorder (!%p1124_p8), %s1358_s30, 0 }
  0x65   : > { %1009 = dma.done.wait (%p1365_p4), %s281_s23, 128  }
  0x66   : > { %1011 = vsyncadd (%p1365_p4), %s281_s23, 4294967168  ;;  %p1366_p5 = scmp.eq.s32.totalorder %s1105_s28, 0 }
  0x68   : > { %1013 = dma.done.wait (%p1366_p5), [#allocation6], 2048   ;;  %p1367_p8 = pmov %p1366_p5 }
  0x69   : > { %v324_v0 = vld [vmem:[%s284_s29] sm:$0xff]  ;;  %v858_v1 = vld [vmem:[#allocation5] sm:$0xff]   ;;  %v1041_v2 = vmov 0.0   ;;  %v859_v3 = vld [vmem:[#allocation5 + $0x8] sm:$0xff]   ;;  %v329_v4 = vlaneseq  ;;  %vm1042_vm1 = vmmov 0   ;;  %s726_s15 = sshll.u32 %s1105_s28, 7 }
  0x6a   : > { %1015 = vsyncadd (%p1367_p8), [#allocation6], 4294965248  ;;  %325 = vadd.xlane.f32.xlu0 %v324_v0  ;;  %747 = vmatprep.subr.bf16.mxu0 %v1041_v2  ;;  %v860_v11 = vld [vmem:[#allocation5 + $0x10] sm:$0xff]   ;;  %v861_v12 = vld [vmem:[#allocation5 + $0x18] sm:$0xff]   ;;  %s322_s19 = scalar_lea.vmem [#allocation8], %s701_s14  ;;  %s1303_s9 = scalar_lea.hbm %s1354_s7, %s726_s15 }
  0x6b   : > { %767 = vmatprep.subr.bf16.mxu1 %v1041_v2  ;;  %748 = vmatpush3.bf16.msra.mxu0 %v858_v1  ;;  %v330_v5 = vand.u32 127, %v329_v4  ;;  %v862_v13 = vld [vmem:[#allocation5 + $0x20] sm:$0xff]   ;;  %v863_v14 = vld [vmem:[#allocation5 + $0x28] sm:$0xff]   ;;  %v864_v15 = vld [vmem:[#allocation5 + $0x30] sm:$0xff]   ;;  %s604_s23 = sshll.u32 %s322_s19, 4  ;;  %s591_s28 = scalar_lea.sflag [#allocation4], %s1253_s12  ;;  %s1305_s23 = int_to_ptr.vmem [resolvable:$true] %s604_s23 }
  0x6c   : > { %749 = vmatprep.subr.bf16.mxu0 %v1041_v2  ;;  %763 = vmatprep.mubr.msk.bf16.mxu0 %vm1042_vm1, %v1041_v2  ;;  %v865_v16 = vld [vmem:[#allocation5 + $0x38] sm:$0xff]   ;;  %v705_v21 = vld [vmem:[%s1348_s1] ss:$0 sm:$0xff]  ;;  %v866_v27 = vld [vmem:[#allocation7] sm:$0xff]   ;;  %s964_s20 = scalar_lea.vmem %s1305_s23, 128  ;;  %p1368_p0 = scmp.ne.s32.totalorder %s1363_s16, 0 }
  0x6d   : > { %vm331_vm0 = vcmp.lt.s32.totalorder %v330_v5, 32  ;;  %783 = vmatprep.mubr.msk.bf16.mxu1 %vm1042_vm1, %v1041_v2  ;;  %v706_v23 = vld [vmem:[%s1349_s2] ss:$0 sm:$0xff]  ;;  %768 = vmatpush3.bf16.msra.mxu1 %v866_v27  ;;  %v867_v28 = vld [vmem:[#allocation7 + $0x8] sm:$0xff]   ;;  %v869_v30 = vld [vmem:[#allocation7 + $0x18] sm:$0xff]   ;;  %p965_p11 = scmp.ne.s32.totalorder %s1305_s23, %s964_s20  ;;  %s1043_s14 = smov [#allocation8]  }
  0x6e   : > { %769 = vmatprep.subr.bf16.mxu1 %v1041_v2  ;;  %v868_v29 = vld [vmem:[#allocation7 + $0x10] sm:$0xff]   ;;  %v870_v31 = vld [vmem:[#allocation7 + $0x20] sm:$0xff]   ;;  %v871_v32 = vld [vmem:[#allocation7 + $0x28] sm:$0xff]   ;;  %s968_s11 = sshll.u32 %s1043_s14, 4  ;;  %s969_s11 = int_to_ptr.vmem [resolvable:$false] %s968_s11 }
  0x6f   : > { %750 = vmatpush3.bf16.msra.mxu0 %v859_v3  ;;  %v872_v33 = vld [vmem:[#allocation7 + $0x30] sm:$0xff]   ;;  %v873_v34 = vld [vmem:[#allocation7 + $0x38] sm:$0xff]   ;;  %p966_p1 = pnand %p965_p11, %p1368_p0  ;;  %s970_s22 = scalar_lea.vmem %s969_s11, 256 }
  0x70   : > { %751 = vmatprep.subr.bf16.mxu0 %v1041_v2  ;;  %v707_v35 = vld [vmem:[%s1351_s4] ss:$0 sm:$0xff]  ;;  %p971_p7 = scmp.lt.s32.totalorder %s1305_s23, %s969_s11  ;;  %p972_p9 = scmp.lt.s32.totalorder %s970_s22, %s964_s20 }
  0x71   : > { %770 = vmatpush3.bf16.msra.mxu1 %v867_v28  ;;  %v716_v51 = vld [vmem:[%s1353_s6] ss:$0 sm:$0xff]  ;;  %p967_p3 = pneg %p966_p1 }
  0x72   : > { %771 = vmatprep.subr.bf16.mxu1 %v1041_v2  ;;  %p973_p12 = por %p972_p9, %p971_p7 }
  0x73   : > { %752 = vmatpush3.bf16.msra.mxu0 %v860_v11 }
  0x74   : > { %753 = vmatprep.subr.bf16.mxu0 %v1041_v2  ;;  %p974_p2 = pnand %p973_p12, %p967_p3 }
  0x75   : > { %772 = vmatpush3.bf16.msra.mxu1 %v868_v29 }
  0x76   : > { %773 = vmatprep.subr.bf16.mxu1 %v1041_v2 }
  0x77   : > { %754 = vmatpush3.bf16.msra.mxu0 %v861_v12 }
  0x78   : > { %755 = vmatprep.subr.bf16.mxu0 %v1041_v2 }
  0x79   : > { %774 = vmatpush3.bf16.msra.mxu1 %v869_v30 }
  0x7a   : > { %775 = vmatprep.subr.bf16.mxu1 %v1041_v2 }
  0x7b   : > { %756 = vmatpush3.bf16.msra.mxu0 %v862_v13 }
  0x7c   : > { %757 = vmatprep.subr.bf16.mxu0 %v1041_v2 }
  0x7d   : > { %776 = vmatpush3.bf16.msra.mxu1 %v870_v31 }
  0x7e   : > { %777 = vmatprep.subr.bf16.mxu1 %v1041_v2 }
  0x7f   : > { %758 = vmatpush3.bf16.msra.mxu0 %v863_v14 }
  0x80   : > { %759 = vmatprep.subr.bf16.mxu0 %v1041_v2 }
  0x81   : > { %778 = vmatpush3.bf16.msra.mxu1 %v871_v32 }
  0x82   : > { %779 = vmatprep.subr.bf16.mxu1 %v1041_v2 }
  0x83   : > { %760 = vmatpush3.bf16.msra.mxu0 %v864_v15 }
  0x84   : > { %761 = vmatprep.subr.bf16.mxu0 %v1041_v2 }
  0x85   : > { %780 = vmatpush3.bf16.msra.mxu1 %v872_v33 }
  0x86   : > { %781 = vmatprep.subr.bf16.mxu1 %v1041_v2 }
  0x87   : > { %762 = vmatpush3.bf16.msra.mxu0 %v865_v16 }
  0x89   : > { %782 = vmatpush3.bf16.msra.mxu1 %v873_v34 }
  0xf7   : > { %v326_v6 = vpop.xlane.xlu0 %325 }
  0xf8   : > { %v327_v7 = vmul.f32 0.03125, %v326_v6 }
  0xfa   : > { %v328_v8 = vsub.f32 %v324_v0, %v327_v7 }
  0xfc   : > { %v332_v9 = vsel %vm331_vm0, %v328_v8, 0.0 }
  0xfd   : > { %v333_v10 = vmul.f32 %v332_v9, %v332_v9 }
  0xff   : > { %334 = vadd.xlane.f32.xlu0 %v333_v10 }
 0x18c   : > { %v335_v17 = vpop.xlane.xlu0 %334 }
 0x18d   : > { %v336_v18 = vmul.f32 0.03125, %v335_v17 }
 0x18f   : > { %v337_v19 = vadd.f32 1e-05, %v336_v18 }
 0x191   : > { %874 = vrsqrt.f32 %v337_v19 }
 0x19b   : > { %v875_v20 = vpop.eup %874 }
 0x19c   : > { %v339_v22 = vmul.f32 %v875_v20, %v332_v9 }
 0x19e   : > { %v347_v24 = vmul.f32 %v705_v21, %v339_v22 }
 0x1a0   : > { %v355_v25 = vadd.f32 %v706_v23, %v347_v24 }
 0x1a2   : > { %v356_v26 = vpack.c.bf16 %v355_v25, %v355_v25 }
 0x1a4   : > { %764 = vmatmul.mubr.bf16.vlgmr.msra.gmra.mrb[0].mxu0 %v356_v26 }
 0x277   : > { %v462_v36 = vpop.f32.mrb[0].mxu0 }
 0x278   : > { %v463_v37 = vadd.f32 %v707_v35, %v462_v36  ;;  %v765_v38 = vpop.f32.mrb[1].mxu0 }
 0x279   : > { %v465_v39 = vpop.f32.mrb[2].mxu0 }
 0x27a   : > { %v468_v40 = vmul.f32 %v463_v37, %v463_v37  ;;  %v766_v41 = vpop.f32.mrb[3].mxu0 }
 0x27c   : > { %v469_v42 = vmul.f32 %v468_v40, %v463_v37 }
 0x27e   : > { %v470_v43 = vmul.f32 0.044715, %v469_v42 }
 0x280   : > { %v471_v44 = vadd.f32 %v470_v43, %v463_v37 }
 0x282   : > { %v472_v45 = vmul.f32 0.7978846, %v471_v44 }
 0x284   : > { %876 = vtanh.f32 %v472_v45 }
 0x28e   : > { %v877_v46 = vpop.eup %876 }
 0x28f   : > { %v474_v47 = vadd.f32 1.0, %v877_v46 }
 0x291   : > { %v475_v48 = vmul.f32 0.5, %v474_v47 }
 0x293   : > { %v476_v49 = vmul.f32 %v475_v48, %v463_v37 }
 0x295   : > { %v477_v50 = vpack.c.bf16 %v476_v49, %v476_v49 }
 0x297   : > { %784 = vmatmul.mubr.bf16.vlgmr.msra.gmra.mrb[0].mxu1 %v477_v50 }
 0x36a   : > { %v583_v52 = vpop.f32.mrb[0].mxu1 }
 0x36b   : > { %v584_v53 = vadd.f32 %v716_v51, %v583_v52  ;;  %v785_v54 = vpop.f32.mrb[1].mxu1 }
 0x36c   : > { %v586_v55 = vpop.f32.mrb[2].mxu1 }
 0x36d   : > { %589 = vst [vmem:[%s322_s19] sm:$0xff] %v584_v53  ;;  %v786_v56 = vpop.f32.mrb[3].mxu1 }
 0x36e   : > { %977 = shalt.err (!%p974_p2)
}
 0x36f   : > { %s978_s12 = scalar_lea.hbm %s1303_s9, 128  ;;  %s982_s21 = scalar_lea.hbm %s1354_s7, 256 }
 0x370   : > { %p979_p13 = scmp.ne.s32.totalorder %s1303_s9, %s978_s12  ;;  %p983_p4 = scmp.lt.u32.totalorder %s1303_s9, %s1354_s7 }
 0x371   : > { %p984_p5 = scmp.lt.u32.totalorder %s982_s21, %s978_s12  ;;  %p986_p11 = scmp.lt.u32.totalorder %s978_s12, %s1303_s9 }
 0x372   : > { %p980_p6 = pnand %p979_p13, %p1368_p0 }
 0x373   : > { %p985_p8 = por %p984_p5, %p983_p4 }
 0x374   : > { %p981_p10 = pneg %p980_p6 }
 0x375   : > { %p987_p1 = por %p986_p11, %p985_p8 }
 0x377   : > { %p988_p3 = pnand %p987_p1, %p981_p10 }
 0x379   : > { %991 = shalt.err (!%p988_p3)
}
 0x37a   : > { %797 = dma.vmem_to_hbm [thread:$0]  (%p1368_p0), %s1305_s23, 128, %s1303_s9, %s591_s28  }
 0x37b PF: > { %s616_s29 = sand.u32 1, %s1022_s24   ;;  %p1369_p7 = scmp.ne.s32.totalorder %s1359_s8, 0 }
 0x37c   : > { %p1370_p9 = scmp.ge.s32.totalorder %s1034_s27, 2  ;;  %s617_s30 = scalar_lea.sflag [#allocation4], %s616_s29 }
 0x37e   : > { %p811_p12 = pnand %p1370_p9, %p1369_p7 }
 0x380   : > { %1017 = dma.done.wait (!%p811_p12), %s617_s30, 128  }
 0x381   : > { %1019 = vsyncadd (!%p811_p12), %s617_s30, 4294967168  ;;  %p21_p2 = scmp.ge.s32.totalorder %s1194_s13, 4   ;;  %s1371_s24 = smov %s1026_s25 }
 0x382   : > { %s1372_s25 = smov %s1030_s26  ;;  %s1373_s26 = smov %s1210_s17 }
 0x383   : > { %s1374_s27 = smov %s1194_s13  ;;  %23 = sbr.rel (!%p21_p2) target bundleno = 6 (0x6), region = 101 }
 0x38a   :  { %622 = vsyncpa [#allocation3], 1 }
 0x38b   :  { %624 = vsyncpa [#allocation3 + $0x1], 1 }
 0x38c   :  { %625 = vsyncpa [#allocation6], 1 }
 0x38d   :  { %626 = vsyncpa [#allocation4], 1 }
 0x38e   :  { %628 = vsyncpa [#allocation4 + $0x1], 1 }

</bundles_post_ra>
